<compile_context>
chip_gen: v7x
topology: tpu7x:2x2x1
jax: 0.10.0
libtpu: 0.0.40
codegen_flags: <defaults>
</compile_context>

<pallas_src>
import jax
import jax.numpy as jnp
from jax.experimental import pallas as pl
from jax.experimental.pallas import tpu as pltpu


def _rope_kernel(cos_ref, sin_ref, q_ref, k_ref, qo_ref, ko_ref):
    # cos_ref / sin_ref: (D, tS)          -- sin is already sign-folded
    # q_ref / k_ref / qo_ref / ko_ref: (tBH, D, tS)
    half = cos_ref.shape[0] // 2
    cos = cos_ref[...][None, :, :]
    sin = sin_ref[...][None, :, :]

    def apply(x):
        # rotate_half(x) == roll(x, D//2 along D) with the sign folded into sin.
        return x * cos + pltpu.roll(x, half, 1) * sin

    qo_ref[...] = apply(q_ref[...]).astype(qo_ref.dtype)
    ko_ref[...] = apply(k_ref[...]).astype(ko_ref.dtype)


@jax.jit
def _rope_forward(q, k, cos, sin_signed):
    B, S, H, D = q.shape
    BH = B * H
    dtype = q.dtype

    # [B, S, H, D] -> [B*H, D, S]: S becomes the lane (minor-most) axis.
    def to_lane_dense(x):
        return jnp.transpose(x, (0, 2, 3, 1)).reshape(BH, D, S)

    q_t = to_lane_dense(q)
    k_t = to_lane_dense(k)
    cos_t = cos[:S].T.astype(dtype)          # (D, S)
    sin_t = sin_signed[:S].T.astype(dtype)   # (D, S), sign-folded

    # ---- tile sizing ----------------------------------------------------
    # Lane tile along S: full S when small, else a multiple of 128.
    t_s = S if S <= 512 else 512
    # Rows (b*h) per step, sized so the 4 double-buffered data tiles stay
    # around ~8 MiB (portable across v5e/v6e/v7x default scoped-VMEM limits).
    bytes_per_row = D * t_s * jnp.dtype(dtype).itemsize
    t_bh = max(1, min(BH, (8 * 1024 * 1024) // (8 * bytes_per_row)))
    grid = (pl.cdiv(BH, t_bh), pl.cdiv(S, t_s))

    data_spec = pl.BlockSpec((t_bh, D, t_s), lambda i, s: (i, 0, s))
    tab_spec = pl.BlockSpec((D, t_s), lambda i, s: (0, s))

    grid_spec = pl.GridSpec(
        grid=grid,
        in_specs=[tab_spec, tab_spec, data_spec, data_spec],
        out_specs=[data_spec, data_spec],
    )

    qo_t, ko_t = pl.pallas_call(
        _rope_kernel,
        out_shape=(
            jax.ShapeDtypeStruct((BH, D, S), dtype),
            jax.ShapeDtypeStruct((BH, D, S), dtype),
        ),
        grid_spec=grid_spec,
        # RoPE is applied destructively: reuse the q_t / k_t HBM buffers.
        input_output_aliases={2: 0, 3: 1},
        compiler_params=pltpu.CompilerParams(
            dimension_semantics=("parallel", "parallel"),
        ),
    )(cos_t, sin_t, q_t, k_t)

    def from_lane_dense(x):
        return jnp.transpose(x.reshape(B, H, D, S), (0, 3, 1, 2))

    return from_lane_dense(qo_t), from_lane_dense(ko_t)


class RotaryEmbedding:
    """JAX/Pallas port of the PyTorch RotaryEmbedding module."""

    def __init__(self, dim, max_len=1024):
        assert dim % 2 == 0, "RoPE head dim must be even"
        self.dim = dim
        inv_freq = 1.0 / (10000.0 ** (jnp.arange(0, dim, 2, dtype=jnp.float32) / dim))
        pos_id = jnp.arange(0, max_len, dtype=jnp.float32)
        freqs = pos_id[:, None] * inv_freq[None, :]            # [max_len, dim/2]
        emb = jnp.concatenate([freqs, freqs], axis=-1)         # [max_len, dim]
        self.cos = jnp.cos(emb)                                # [max_len, dim]
        self.sin = jnp.sin(emb)                                # [max_len, dim]
        # rotate_half(x) * sin == roll(x, dim//2) * sin_signed,
        # sin_signed = [-sin_half | +sin_half]  (sign folded into the table).
        sin_half = jnp.sin(freqs)
        self.sin_signed = jnp.concatenate([-sin_half, sin_half], axis=-1)

    def __call__(self, q, k):
        B, S, H, D = q.shape
        assert D == self.dim and k.shape == q.shape
        return _rope_forward(q, k, self.cos, self.sin_signed)


# ---------------------------- pure-JAX reference ----------------------------
def _rotate_half(x):
    d = x.shape[-1]
    return jnp.concatenate([-x[..., d // 2:], x[..., : d // 2]], axis=-1)


def _reference(q, k, cos, sin):
    cosb = cos[None, :, None, :]
    sinb = sin[None, :, None, :]
    q_emb = q * cosb + _rotate_half(q) * sinb
    k_emb = k * cosb + _rotate_half(k) * sinb
    return q_emb, k_emb


if __name__ == "__main__":
    key = jax.random.PRNGKey(0)
    rope = RotaryEmbedding(dim=32, max_len=1024)

    # (small test shape, plus one shape that exercises the multi-step grid)
    for (B, S, H, D) in [(2, 8, 4, 32), (1, 1024, 2, 32)]:
        kq, kk, key = jax.random.split(key, 3)
        q = jax.random.normal(kq, (B, S, H, D), dtype=jnp.float32)
        k = jax.random.normal(kk, (B, S, H, D), dtype=jnp.float32)

        q_emb, k_emb = rope(q, k)
        jax.block_until_ready((q_emb, k_emb))

        q_ref, k_ref = _reference(q, k, rope.cos[:S], rope.sin[:S])
        assert q_emb.shape == q.shape and k_emb.shape == k.shape
        assert jnp.allclose(q_emb, q_ref, atol=1e-5, rtol=1e-5)
        assert jnp.allclose(k_emb, k_ref, atol=1e-5, rtol=1e-5)

    print("KERNEL_OK")
</pallas_src>

<mosaic_0001>
module attributes {stable_mosaic.version = 11 : i64} {
  func.func @_rope_kernel(%arg0: i32, %arg1: i32, %arg2: memref<32x8xf32, #tpu.memory_space<vmem>>, %arg3: memref<32x8xf32, #tpu.memory_space<vmem>>, %arg4: memref<8x32x8xf32, #tpu.memory_space<vmem>>, %arg5: memref<8x32x8xf32, #tpu.memory_space<vmem>>, %arg6: memref<8x32x8xf32, #tpu.memory_space<vmem>>, %arg7: memref<8x32x8xf32, #tpu.memory_space<vmem>>) attributes {dimension_semantics = [#tpu.dimension_semantics<parallel>, #tpu.dimension_semantics<parallel>], iteration_bounds = array<i64: 1, 1>, scalar_prefetch = 0 : i64, scratch_operands = 0 : i64, tpu.core_type = #tpu.core_type<tc>, window_params = [{transform_indices = @transform_0, window_bounds = array<i64: 32, 8>}, {transform_indices = @transform_1, window_bounds = array<i64: 32, 8>}, {transform_indices = @transform_2, window_bounds = array<i64: 8, 32, 8>}, {transform_indices = @transform_3, window_bounds = array<i64: 8, 32, 8>}, {transform_indices = @transform_4, window_bounds = array<i64: 8, 32, 8>}, {transform_indices = @transform_5, window_bounds = array<i64: 8, 32, 8>}]} {
    %c0 = arith.constant 0 : index
    %c0_0 = arith.constant 0 : index
    %0 = vector.load %arg2[%c0, %c0_0] : memref<32x8xf32, #tpu.memory_space<vmem>>, vector<32x8xf32>
    %1 = vector.shape_cast %0 : vector<32x8xf32> to vector<1x32x8xf32>
    %c0_1 = arith.constant 0 : index
    %c0_2 = arith.constant 0 : index
    %2 = vector.load %arg3[%c0_1, %c0_2] : memref<32x8xf32, #tpu.memory_space<vmem>>, vector<32x8xf32>
    %3 = vector.shape_cast %2 : vector<32x8xf32> to vector<1x32x8xf32>
    %c0_3 = arith.constant 0 : index
    %c0_4 = arith.constant 0 : index
    %c0_5 = arith.constant 0 : index
    %4 = vector.load %arg4[%c0_3, %c0_4, %c0_5] : memref<8x32x8xf32, #tpu.memory_space<vmem>>, vector<8x32x8xf32>
    %5 = vector.broadcast %1 : vector<1x32x8xf32> to vector<8x32x8xf32>
    %6 = arith.mulf %4, %5 : vector<8x32x8xf32>
    %c16_i32 = arith.constant 16 : i32
    %7 = tpu.dynamic_rotate %4 by %c16_i32 dim 1 : vector<8x32x8xf32>, i32 -> vector<8x32x8xf32>
    %8 = vector.broadcast %3 : vector<1x32x8xf32> to vector<8x32x8xf32>
    %9 = arith.mulf %7, %8 : vector<8x32x8xf32>
    %10 = arith.addf %6, %9 : vector<8x32x8xf32>
    %c0_6 = arith.constant 0 : index
    %c0_7 = arith.constant 0 : index
    %c0_8 = arith.constant 0 : index
    %11 = vector.load %arg6[%c0_6, %c0_7, %c0_8] : memref<8x32x8xf32, #tpu.memory_space<vmem>>, vector<8x32x8xf32>
    tpu.vector_store %arg6[%c0_6, %c0_7, %c0_8], %10 {strides = array<i32>} : memref<8x32x8xf32, #tpu.memory_space<vmem>>, vector<8x32x8xf32>,
    %c0_9 = arith.constant 0 : index
    %c0_10 = arith.constant 0 : index
    %c0_11 = arith.constant 0 : index
    %12 = vector.load %arg5[%c0_9, %c0_10, %c0_11] : memref<8x32x8xf32, #tpu.memory_space<vmem>>, vector<8x32x8xf32>
    %13 = vector.broadcast %1 : vector<1x32x8xf32> to vector<8x32x8xf32>
    %14 = arith.mulf %12, %13 : vector<8x32x8xf32>
    %c16_i32_12 = arith.constant 16 : i32
    %15 = tpu.dynamic_rotate %12 by %c16_i32_12 dim 1 : vector<8x32x8xf32>, i32 -> vector<8x32x8xf32>
    %16 = vector.broadcast %3 : vector<1x32x8xf32> to vector<8x32x8xf32>
    %17 = arith.mulf %15, %16 : vector<8x32x8xf32>
    %18 = arith.addf %14, %17 : vector<8x32x8xf32>
    %c0_13 = arith.constant 0 : index
    %c0_14 = arith.constant 0 : index
    %c0_15 = arith.constant 0 : index
    %19 = vector.load %arg7[%c0_13, %c0_14, %c0_15] : memref<8x32x8xf32, #tpu.memory_space<vmem>>, vector<8x32x8xf32>
    tpu.vector_store %arg7[%c0_13, %c0_14, %c0_15], %18 {strides = array<i32>} : memref<8x32x8xf32, #tpu.memory_space<vmem>>, vector<8x32x8xf32>,
    return
  }
  func.func @transform_0(%arg0: i32, %arg1: i32) -> (i32, i32) {
    %c0_i32 = arith.constant 0 : i32
    %c0_i32_0 = arith.constant 0 : i32
    return %c0_i32, %arg1 : i32, i32
  }
  func.func @transform_1(%arg0: i32, %arg1: i32) -> (i32, i32) {
    %c0_i32 = arith.constant 0 : i32
    %c0_i32_0 = arith.constant 0 : i32
    return %c0_i32, %arg1 : i32, i32
  }
  func.func @transform_2(%arg0: i32, %arg1: i32) -> (i32, i32, i32) {
    %c0_i32 = arith.constant 0 : i32
    %c0_i32_0 = arith.constant 0 : i32
    return %arg0, %c0_i32, %arg1 : i32, i32, i32
  }
  func.func @transform_3(%arg0: i32, %arg1: i32) -> (i32, i32, i32) {
    %c0_i32 = arith.constant 0 : i32
    %c0_i32_0 = arith.constant 0 : i32
    return %arg0, %c0_i32, %arg1 : i32, i32, i32
  }
  func.func @transform_4(%arg0: i32, %arg1: i32) -> (i32, i32, i32) {
    %c0_i32 = arith.constant 0 : i32
    %c0_i32_0 = arith.constant 0 : i32
    return %arg0, %c0_i32, %arg1 : i32, i32, i32
  }
  func.func @transform_5(%arg0: i32, %arg1: i32) -> (i32, i32, i32) {
    %c0_i32 = arith.constant 0 : i32
    %c0_i32_0 = arith.constant 0 : i32
    return %arg0, %c0_i32, %arg1 : i32, i32, i32
  }
}

</mosaic_0001>

<bundles_post_ra>
// kernel: _rope_forward.1
= control target key start
LH: loop header
LB: loop body
LE: loop exit
PB: predicated region body
PF: predicated region fallthrough
CT: control target
= control target key end

     0   :  { %vm155_vm0 = vcmask 64512   ;;  %s1002_s0 = inlined_call_operand.vmem [shape: f32[32,8], index: 0, kind: input, shape index: {}]   ;;  %s1003_s1 = inlined_call_operand.vmem [shape: f32[32,8], index: 1, kind: input, shape index: {}]   ;;  %s1004_s2 = inlined_call_operand.vmem [shape: f32[8,32,8], index: 2, kind: input, shape index: {}, may-alias: {2,4}]   ;;  %s1005_s4 = inlined_call_operand.vmem [shape: f32[8,32,8], index: 4, kind: output, shape index: {0}, may-alias: {2,4}]   ;;  %s1006_s3 = inlined_call_operand.vmem [shape: f32[8,32,8], index: 3, kind: input, shape index: {}, may-alias: {3,5}]   ;;  %s1007_s5 = inlined_call_operand.vmem [shape: f32[8,32,8], index: 5, kind: output, shape index: {1}, may-alias: {3,5}]  }
   0x1   :  { %v389_v0 = vld [vmem:[%s1002_s0] sm:$0xff]  ;;  %v399_v2 = vld [vmem:[%s1003_s1 + $0x10] sm:$0xff]  ;;  %v410_v5 = vld [vmem:[%s1002_s0 + $0x8] sm:$0xff] }
   0x2   :  { %v394_v1 = vld [vmem:[%s1003_s1] sm:$0xff]  ;;  %v29_v4 = vld [vmem:[%s1004_s2 + $0x10] sm:$0xff]  ;;  %v418_v9 = vld [vmem:[%s1003_s1 + $0x8] sm:$0xff] }
   0x3   :  { %v27_v3 = vld [vmem:[%s1004_s2] sm:$0xff]  ;;  %v91_v7 = vmul.f32 %v29_v4, %v394_v1  ;;  %v423_v10 = vld [vmem:[%s1003_s1 + $0x18] sm:$0xff]  ;;  %v28_v11 = vld [vmem:[%s1004_s2 + $0x8] sm:$0xff] }
   0x4   :  { %v59_v6 = vmul.f32 %v27_v3, %v389_v0  ;;  %v93_v8 = vmul.f32 %v27_v3, %v399_v2  ;;  %v30_v12 = vld [vmem:[%s1004_s2 + $0x18] sm:$0xff]  ;;  %v60_v13 = vmul.f32 %v28_v11, %v410_v5  ;;  %v94_v14 = vmul.f32 %v28_v11, %v423_v10  ;;  %v436_v15 = vld [vmem:[%s1002_s0 + $0x10] sm:$0xff]  ;;  %v31_v21 = vld [vmem:[%s1004_s2 + $0x20] sm:$0xff] }
   0x5   :  { %v441_v16 = vld [vmem:[%s1002_s0 + $0x18] sm:$0xff]  ;;  %v92_v18 = vmul.f32 %v30_v12, %v418_v9  ;;  %v61_v19 = vmul.f32 %v29_v4, %v436_v15  ;;  %v33_v22 = vld [vmem:[%s1004_s2 + $0x30] sm:$0xff]  ;;  %v32_v23 = vld [vmem:[%s1004_s2 + $0x28] sm:$0xff]  ;;  %v63_v24 = vmul.f32 %v31_v21, %v389_v0  ;;  %v97_v26 = vmul.f32 %v31_v21, %v399_v2 }
   0x6   :  { %v123_v17 = vadd.f32 %v91_v7, %v59_v6  ;;  %v62_v20 = vmul.f32 %v30_v12, %v441_v16  ;;  %v95_v25 = vmul.f32 %v33_v22, %v394_v1  ;;  %v34_v27 = vld [vmem:[%s1004_s2 + $0x38] sm:$0xff]  ;;  %v64_v28 = vmul.f32 %v32_v23, %v410_v5  ;;  %v35_v29 = vld [vmem:[%s1004_s2 + $0x40] sm:$0xff]  ;;  %v37_v30 = vld [vmem:[%s1004_s2 + $0x50] sm:$0xff] }
   0x7   :  { %v124_v31 = vadd.f32 %v92_v18, %v60_v13  ;;  %v125_v32 = vadd.f32 %v93_v8, %v61_v19  ;;  %v96_v34 = vmul.f32 %v34_v27, %v418_v9  ;;  %v98_v38 = vmul.f32 %v32_v23, %v423_v10 }
   0x8   :  { %156 = vst.msk [vmem:[%s1005_s4] sm:$0xff] %vm155_vm0, %v123_v17  ;;  %v126_v33 = vadd.f32 %v94_v14, %v62_v20  ;;  %v127_v37 = vadd.f32 %v95_v25, %v63_v24  ;;  %v65_v39 = vmul.f32 %v33_v22, %v436_v15  ;;  %v66_v40 = vmul.f32 %v34_v27, %v441_v16 }
   0x9   :  { %v128_v41 = vadd.f32 %v96_v34, %v64_v28  ;;  %v67_v42 = vmul.f32 %v35_v29, %v389_v0  ;;  %v99_v43 = vmul.f32 %v37_v30, %v394_v1  ;;  %v101_v44 = vmul.f32 %v35_v29, %v399_v2 }
   0xa   :  { %v129_v47 = vadd.f32 %v97_v26, %v65_v39  ;;  %v130_v48 = vadd.f32 %v98_v38, %v66_v40  ;;  %v69_v55 = vmul.f32 %v37_v30, %v436_v15 }
   0xb   :  { %v131_v53 = vadd.f32 %v99_v43, %v67_v42 }
   0xc   :  { %v133_v63 = vadd.f32 %v101_v44, %v69_v55 }
   0xf   :  { %v36_v35 = vld [vmem:[%s1004_s2 + $0x48] sm:$0xff]  ;;  %v38_v36 = vld [vmem:[%s1004_s2 + $0x58] sm:$0xff] }
  0x10   :  { %157 = vst.msk [vmem:[%s1005_s4 + $0x8] sm:$0xff] %vm155_vm0, %v124_v31  ;;  %158 = vst.msk [vmem:[%s1005_s4 + $0x10] sm:$0xff] %vm155_vm0, %v125_v32  ;;  %v68_v49 = vmul.f32 %v36_v35, %v410_v5  ;;  %v100_v50 = vmul.f32 %v38_v36, %v418_v9  ;;  %v102_v54 = vmul.f32 %v36_v35, %v423_v10 }
  0x11   :  { %159 = vst.msk [vmem:[%s1005_s4 + $0x18] sm:$0xff] %vm155_vm0, %v126_v33  ;;  %v70_v56 = vmul.f32 %v38_v36, %v441_v16 }
  0x12   :  { %v132_v57 = vadd.f32 %v100_v50, %v68_v49 }
  0x13   :  { %v134_v3 = vadd.f32 %v102_v54, %v70_v56 }
  0x18   :  { %v39_v45 = vld [vmem:[%s1004_s2 + $0x60] sm:$0xff]  ;;  %v41_v46 = vld [vmem:[%s1004_s2 + $0x70] sm:$0xff] }
  0x19   :  { %160 = vst.msk [vmem:[%s1005_s4 + $0x20] sm:$0xff] %vm155_vm0, %v127_v37  ;;  %v71_v58 = vmul.f32 %v39_v45, %v389_v0  ;;  %v103_v59 = vmul.f32 %v41_v46, %v394_v1  ;;  %v105_v60 = vmul.f32 %v39_v45, %v399_v2  ;;  %v73_v13 = vmul.f32 %v41_v46, %v436_v15 }
  0x1b   :  { %v135_v11 = vadd.f32 %v103_v59, %v71_v58  ;;  %v137_v23 = vadd.f32 %v105_v60, %v73_v13 }
  0x20   :  { %v40_v51 = vld [vmem:[%s1004_s2 + $0x68] sm:$0xff]  ;;  %v42_v52 = vld [vmem:[%s1004_s2 + $0x78] sm:$0xff] }
  0x21   :  { %161 = vst.msk [vmem:[%s1005_s4 + $0x28] sm:$0xff] %vm155_vm0, %v128_v41  ;;  %162 = vst.msk [vmem:[%s1005_s4 + $0x30] sm:$0xff] %vm155_vm0, %v129_v47  ;;  %v72_v4 = vmul.f32 %v40_v51, %v410_v5  ;;  %v104_v6 = vmul.f32 %v42_v52, %v418_v9  ;;  %v106_v12 = vmul.f32 %v40_v51, %v423_v10 }
  0x22   :  { %163 = vst.msk [vmem:[%s1005_s4 + $0x38] sm:$0xff] %vm155_vm0, %v130_v48  ;;  %v74_v14 = vmul.f32 %v42_v52, %v441_v16 }
  0x23   :  { %v136_v17 = vadd.f32 %v104_v6, %v72_v4 }
  0x24   :  { %v138_v24 = vadd.f32 %v106_v12, %v74_v14  ;;  %v190_v12 = vld [vmem:[%s1006_s3 + $0x10] sm:$0xff] }
  0x29   :  { %v43_v61 = vld [vmem:[%s1004_s2 + $0x80] sm:$0xff]  ;;  %v45_v62 = vld [vmem:[%s1004_s2 + $0x90] sm:$0xff] }
  0x2a   :  { %164 = vst.msk [vmem:[%s1005_s4 + $0x40] sm:$0xff] %vm155_vm0, %v131_v53  ;;  %v75_v18 = vmul.f32 %v43_v61, %v389_v0  ;;  %v107_v19 = vmul.f32 %v45_v62, %v394_v1  ;;  %v109_v20 = vmul.f32 %v43_v61, %v399_v2  ;;  %v77_v31 = vmul.f32 %v45_v62, %v436_v15 }
  0x2c   :  { %v139_v29 = vadd.f32 %v107_v19, %v75_v18  ;;  %v141_v39 = vadd.f32 %v109_v20, %v77_v31  ;;  %v189_v19 = vld [vmem:[%s1006_s3 + $0x8] sm:$0xff]  ;;  %v191_v20 = vld [vmem:[%s1006_s3 + $0x18] sm:$0xff] }
  0x31   :  { %v44_v7 = vld [vmem:[%s1004_s2 + $0x88] sm:$0xff]  ;;  %v46_v8 = vld [vmem:[%s1004_s2 + $0x98] sm:$0xff] }
  0x32   :  { %165 = vst.msk [vmem:[%s1005_s4 + $0x48] sm:$0xff] %vm155_vm0, %v132_v57  ;;  %166 = vst.msk [vmem:[%s1005_s4 + $0x50] sm:$0xff] %vm155_vm0, %v133_v63  ;;  %v76_v25 = vmul.f32 %v44_v7, %v410_v5  ;;  %v108_v26 = vmul.f32 %v46_v8, %v418_v9  ;;  %v110_v30 = vmul.f32 %v44_v7, %v423_v10 }
  0x33   :  { %167 = vst.msk [vmem:[%s1005_s4 + $0x58] sm:$0xff] %vm155_vm0, %v134_v3  ;;  %v78_v32 = vmul.f32 %v46_v8, %v441_v16 }
  0x34   :  { %v140_v33 = vadd.f32 %v108_v26, %v76_v25 }
  0x35   :  { %v142_v40 = vadd.f32 %v110_v30, %v78_v32  ;;  %v194_v30 = vld [vmem:[%s1006_s3 + $0x30] sm:$0xff] }
  0x3a   :  { %v47_v21 = vld [vmem:[%s1004_s2 + $0xa0] sm:$0xff]  ;;  %v49_v22 = vld [vmem:[%s1004_s2 + $0xb0] sm:$0xff] }
  0x3b   :  { %168 = vst.msk [vmem:[%s1005_s4 + $0x60] sm:$0xff] %vm155_vm0, %v135_v11  ;;  %v79_v34 = vmul.f32 %v47_v21, %v389_v0  ;;  %v111_v35 = vmul.f32 %v49_v22, %v394_v1  ;;  %v113_v36 = vmul.f32 %v47_v21, %v399_v2  ;;  %v81_v47 = vmul.f32 %v49_v22, %v436_v15  ;;  %v188_v11 = vld [vmem:[%s1006_s3] sm:$0xff] }
  0x3c   :  { %v220_v26 = vmul.f32 %v188_v11, %v389_v0 }
  0x3d   :  { %v143_v45 = vadd.f32 %v111_v35, %v79_v34  ;;  %v145_v55 = vadd.f32 %v113_v36, %v81_v47  ;;  %v253_v34 = vmul.f32 %v191_v20, %v418_v9  ;;  %v193_v35 = vld [vmem:[%s1006_s3 + $0x28] sm:$0xff]  ;;  %v195_v36 = vld [vmem:[%s1006_s3 + $0x38] sm:$0xff] }
  0x42   :  { %v48_v27 = vld [vmem:[%s1004_s2 + $0xa8] sm:$0xff]  ;;  %v50_v28 = vld [vmem:[%s1004_s2 + $0xb8] sm:$0xff] }
  0x43   :  { %169 = vst.msk [vmem:[%s1005_s4 + $0x68] sm:$0xff] %vm155_vm0, %v136_v17  ;;  %170 = vst.msk [vmem:[%s1005_s4 + $0x70] sm:$0xff] %vm155_vm0, %v137_v23  ;;  %v80_v41 = vmul.f32 %v48_v27, %v410_v5  ;;  %v112_v42 = vmul.f32 %v50_v28, %v418_v9  ;;  %v114_v46 = vmul.f32 %v48_v27, %v423_v10 }
  0x44   :  { %171 = vst.msk [vmem:[%s1005_s4 + $0x78] sm:$0xff] %vm155_vm0, %v138_v24  ;;  %v82_v48 = vmul.f32 %v50_v28, %v441_v16  ;;  %v252_v27 = vmul.f32 %v190_v12, %v394_v1  ;;  %v254_v28 = vmul.f32 %v188_v11, %v399_v2 }
  0x45   :  { %v144_v49 = vadd.f32 %v112_v42, %v80_v41 }
  0x46   :  { %v146_v56 = vadd.f32 %v114_v46, %v82_v48  ;;  %v198_v46 = vld [vmem:[%s1006_s3 + $0x50] sm:$0xff] }
  0x4b   :  { %v51_v37 = vld [vmem:[%s1004_s2 + $0xc0] sm:$0xff]  ;;  %v53_v38 = vld [vmem:[%s1004_s2 + $0xd0] sm:$0xff] }
  0x4c   :  { %172 = vst.msk [vmem:[%s1005_s4 + $0x80] sm:$0xff] %vm155_vm0, %v139_v29  ;;  %v83_v50 = vmul.f32 %v51_v37, %v389_v0  ;;  %v115_v51 = vmul.f32 %v53_v38, %v394_v1  ;;  %v117_v52 = vmul.f32 %v51_v37, %v399_v2  ;;  %v85_v63 = vmul.f32 %v53_v38, %v436_v15  ;;  %v192_v29 = vld [vmem:[%s1006_s3 + $0x20] sm:$0xff] }
  0x4d   :  { %v284_v37 = vadd.f32 %v252_v27, %v220_v26  ;;  %v255_v38 = vmul.f32 %v189_v19, %v423_v10  ;;  %v224_v42 = vmul.f32 %v192_v29, %v389_v0 }
  0x4e   :  { %v147_v61 = vadd.f32 %v115_v51, %v83_v50  ;;  %v149_v13 = vadd.f32 %v117_v52, %v85_v63  ;;  %v257_v50 = vmul.f32 %v195_v36, %v418_v9 }
  0x53   :  { %v52_v43 = vld [vmem:[%s1004_s2 + $0xc8] sm:$0xff]  ;;  %v54_v44 = vld [vmem:[%s1004_s2 + $0xd8] sm:$0xff] }
  0x54   :  { %173 = vst.msk [vmem:[%s1005_s4 + $0x88] sm:$0xff] %vm155_vm0, %v140_v33  ;;  %174 = vst.msk [vmem:[%s1005_s4 + $0x90] sm:$0xff] %vm155_vm0, %v141_v39  ;;  %v84_v57 = vmul.f32 %v52_v43, %v410_v5  ;;  %v116_v58 = vmul.f32 %v54_v44, %v418_v9  ;;  %v118_v62 = vmul.f32 %v52_v43, %v423_v10 }
  0x55   :  { %175 = vst.msk [vmem:[%s1005_s4 + $0x98] sm:$0xff] %vm155_vm0, %v142_v40  ;;  %v86_v3 = vmul.f32 %v54_v44, %v441_v16  ;;  %v221_v33 = vmul.f32 %v189_v19, %v410_v5  ;;  %v222_v39 = vmul.f32 %v190_v12, %v436_v15  ;;  %v223_v40 = vmul.f32 %v191_v20, %v441_v16 }
  0x56   :  { %v148_v4 = vadd.f32 %v116_v58, %v84_v57  ;;  %v256_v43 = vmul.f32 %v194_v30, %v394_v1  ;;  %v258_v44 = vmul.f32 %v192_v29, %v399_v2 }
  0x57   :  { %v150_v14 = vadd.f32 %v118_v62, %v86_v3  ;;  %v285_v41 = vadd.f32 %v253_v34, %v221_v33  ;;  %v286_v47 = vadd.f32 %v254_v28, %v222_v39  ;;  %v287_v48 = vadd.f32 %v255_v38, %v223_v40 }
  0x5c   :  { %v55_v53 = vld [vmem:[%s1004_s2 + $0xe0] sm:$0xff]  ;;  %v57_v54 = vld [vmem:[%s1004_s2 + $0xf0] sm:$0xff] }
  0x5d   :  { %176 = vst.msk [vmem:[%s1005_s4 + $0xa0] sm:$0xff] %vm155_vm0, %v143_v45  ;;  %v87_v6 = vmul.f32 %v55_v53, %v389_v0  ;;  %v119_v7 = vmul.f32 %v57_v54, %v394_v1  ;;  %v121_v8 = vmul.f32 %v55_v53, %v399_v2  ;;  %v89_v23 = vmul.f32 %v57_v54, %v436_v15  ;;  %v196_v45 = vld [vmem:[%s1006_s3 + $0x40] sm:$0xff] }
  0x5e   :  { %316 = vst.msk [vmem:[%s1007_s5] sm:$0xff] %vm155_vm0, %v284_v37  ;;  %v288_v53 = vadd.f32 %v256_v43, %v224_v42  ;;  %v259_v54 = vmul.f32 %v193_v35, %v423_v10  ;;  %v228_v58 = vmul.f32 %v196_v45, %v389_v0 }
  0x5f   :  { %v151_v21 = vadd.f32 %v119_v7, %v87_v6  ;;  %v153_v31 = vadd.f32 %v121_v8, %v89_v23 }
  0x64   :  { %v56_v59 = vld [vmem:[%s1004_s2 + $0xe8] sm:$0xff]  ;;  %v58_v60 = vld [vmem:[%s1004_s2 + $0xf8] sm:$0xff] }
  0x65   :  { %177 = vst.msk [vmem:[%s1005_s4 + $0xa8] sm:$0xff] %vm155_vm0, %v144_v49  ;;  %178 = vst.msk [vmem:[%s1005_s4 + $0xb0] sm:$0xff] %vm155_vm0, %v145_v55  ;;  %v88_v17 = vmul.f32 %v56_v59, %v410_v5  ;;  %v120_v18 = vmul.f32 %v58_v60, %v418_v9  ;;  %v122_v22 = vmul.f32 %v56_v59, %v423_v10  ;;  %v197_v51 = vld [vmem:[%s1006_s3 + $0x48] sm:$0xff]  ;;  %v199_v52 = vld [vmem:[%s1006_s3 + $0x58] sm:$0xff] }
  0x66   :  { %179 = vst.msk [vmem:[%s1005_s4 + $0xb8] sm:$0xff] %vm155_vm0, %v146_v56  ;;  %180 = vst.msk [vmem:[%s1005_s4 + $0xc0] sm:$0xff] %vm155_vm0, %v147_v61  ;;  %v90_v24 = vmul.f32 %v58_v60, %v441_v16  ;;  %v225_v49 = vmul.f32 %v193_v35, %v410_v5  ;;  %v226_v55 = vmul.f32 %v194_v30, %v436_v15 }
  0x67   :  { %181 = vst.msk [vmem:[%s1005_s4 + $0xc8] sm:$0xff] %vm155_vm0, %v148_v4  ;;  %182 = vst.msk [vmem:[%s1005_s4 + $0xd0] sm:$0xff] %vm155_vm0, %v149_v13  ;;  %v152_v25 = vadd.f32 %v120_v18, %v88_v17  ;;  %v227_v56 = vmul.f32 %v195_v36, %v441_v16  ;;  %v260_v59 = vmul.f32 %v198_v46, %v394_v1 }
  0x68   :  { %183 = vst.msk [vmem:[%s1005_s4 + $0xd8] sm:$0xff] %vm155_vm0, %v150_v14  ;;  %184 = vst.msk [vmem:[%s1005_s4 + $0xe0] sm:$0xff] %vm155_vm0, %v151_v21  ;;  %v154_v32 = vadd.f32 %v122_v22, %v90_v24  ;;  %v289_v57 = vadd.f32 %v257_v50, %v225_v49  ;;  %v262_v60 = vmul.f32 %v196_v45, %v399_v2 }
  0x69   :  { %185 = vst.msk [vmem:[%s1005_s4 + $0xe8] sm:$0xff] %vm155_vm0, %v152_v25  ;;  %186 = vst.msk [vmem:[%s1005_s4 + $0xf0] sm:$0xff] %vm155_vm0, %v153_v31  ;;  %v290_v63 = vadd.f32 %v258_v44, %v226_v55  ;;  %v291_v3 = vadd.f32 %v259_v54, %v227_v56  ;;  %v229_v4 = vmul.f32 %v197_v51, %v410_v5 }
  0x6a   :  { %187 = vst.msk [vmem:[%s1005_s4 + $0xf8] sm:$0xff] %vm155_vm0, %v154_v32  ;;  %317 = vst.msk [vmem:[%s1007_s5 + $0x8] sm:$0xff] %vm155_vm0, %v285_v41  ;;  %v261_v6 = vmul.f32 %v199_v52, %v418_v9  ;;  %v292_v11 = vadd.f32 %v260_v59, %v228_v58  ;;  %v263_v12 = vmul.f32 %v197_v51, %v423_v10 }
  0x6b   :  { %318 = vst.msk [vmem:[%s1007_s5 + $0x10] sm:$0xff] %vm155_vm0, %v286_v47  ;;  %319 = vst.msk [vmem:[%s1007_s5 + $0x18] sm:$0xff] %vm155_vm0, %v287_v48  ;;  %v230_v13 = vmul.f32 %v198_v46, %v436_v15  ;;  %v231_v14 = vmul.f32 %v199_v52, %v441_v16 }
  0x6c   :  { %v293_v17 = vadd.f32 %v261_v6, %v229_v4 }
  0x6d   :  { %v294_v23 = vadd.f32 %v262_v60, %v230_v13  ;;  %v295_v24 = vadd.f32 %v263_v12, %v231_v14 }
  0x72   :  { %v200_v61 = vld [vmem:[%s1006_s3 + $0x60] sm:$0xff]  ;;  %v202_v62 = vld [vmem:[%s1006_s3 + $0x70] sm:$0xff] }
  0x73   :  { %320 = vst.msk [vmem:[%s1007_s5 + $0x20] sm:$0xff] %vm155_vm0, %v288_v53  ;;  %v232_v18 = vmul.f32 %v200_v61, %v389_v0  ;;  %v264_v19 = vmul.f32 %v202_v62, %v394_v1  ;;  %v266_v20 = vmul.f32 %v200_v61, %v399_v2  ;;  %v234_v31 = vmul.f32 %v202_v62, %v436_v15 }
  0x75   :  { %v296_v29 = vadd.f32 %v264_v19, %v232_v18  ;;  %v298_v39 = vadd.f32 %v266_v20, %v234_v31 }
  0x7a   :  { %v201_v7 = vld [vmem:[%s1006_s3 + $0x68] sm:$0xff]  ;;  %v203_v8 = vld [vmem:[%s1006_s3 + $0x78] sm:$0xff] }
  0x7b   :  { %321 = vst.msk [vmem:[%s1007_s5 + $0x28] sm:$0xff] %vm155_vm0, %v289_v57  ;;  %322 = vst.msk [vmem:[%s1007_s5 + $0x30] sm:$0xff] %vm155_vm0, %v290_v63  ;;  %v233_v25 = vmul.f32 %v201_v7, %v410_v5  ;;  %v265_v26 = vmul.f32 %v203_v8, %v418_v9  ;;  %v267_v30 = vmul.f32 %v201_v7, %v423_v10 }
  0x7c   :  { %323 = vst.msk [vmem:[%s1007_s5 + $0x38] sm:$0xff] %vm155_vm0, %v291_v3  ;;  %v235_v32 = vmul.f32 %v203_v8, %v441_v16 }
  0x7d   :  { %v297_v33 = vadd.f32 %v265_v26, %v233_v25 }
  0x7e   :  { %v299_v40 = vadd.f32 %v267_v30, %v235_v32 }
  0x83   :  { %v204_v21 = vld [vmem:[%s1006_s3 + $0x80] sm:$0xff]  ;;  %v206_v22 = vld [vmem:[%s1006_s3 + $0x90] sm:$0xff] }
  0x84   :  { %324 = vst.msk [vmem:[%s1007_s5 + $0x40] sm:$0xff] %vm155_vm0, %v292_v11  ;;  %v236_v34 = vmul.f32 %v204_v21, %v389_v0  ;;  %v268_v35 = vmul.f32 %v206_v22, %v394_v1  ;;  %v270_v36 = vmul.f32 %v204_v21, %v399_v2  ;;  %v238_v47 = vmul.f32 %v206_v22, %v436_v15 }
  0x86   :  { %v300_v45 = vadd.f32 %v268_v35, %v236_v34  ;;  %v302_v55 = vadd.f32 %v270_v36, %v238_v47 }
  0x8b   :  { %v205_v27 = vld [vmem:[%s1006_s3 + $0x88] sm:$0xff]  ;;  %v207_v28 = vld [vmem:[%s1006_s3 + $0x98] sm:$0xff] }
  0x8c   :  { %325 = vst.msk [vmem:[%s1007_s5 + $0x48] sm:$0xff] %vm155_vm0, %v293_v17  ;;  %326 = vst.msk [vmem:[%s1007_s5 + $0x50] sm:$0xff] %vm155_vm0, %v294_v23  ;;  %v237_v41 = vmul.f32 %v205_v27, %v410_v5  ;;  %v269_v42 = vmul.f32 %v207_v28, %v418_v9  ;;  %v271_v46 = vmul.f32 %v205_v27, %v423_v10 }
  0x8d   :  { %327 = vst.msk [vmem:[%s1007_s5 + $0x58] sm:$0xff] %vm155_vm0, %v295_v24  ;;  %v239_v48 = vmul.f32 %v207_v28, %v441_v16 }
  0x8e   :  { %v301_v49 = vadd.f32 %v269_v42, %v237_v41 }
  0x8f   :  { %v303_v56 = vadd.f32 %v271_v46, %v239_v48 }
  0x94   :  { %v208_v37 = vld [vmem:[%s1006_s3 + $0xa0] sm:$0xff]  ;;  %v210_v38 = vld [vmem:[%s1006_s3 + $0xb0] sm:$0xff] }
  0x95   :  { %328 = vst.msk [vmem:[%s1007_s5 + $0x60] sm:$0xff] %vm155_vm0, %v296_v29  ;;  %v240_v50 = vmul.f32 %v208_v37, %v389_v0  ;;  %v272_v51 = vmul.f32 %v210_v38, %v394_v1  ;;  %v274_v52 = vmul.f32 %v208_v37, %v399_v2  ;;  %v242_v63 = vmul.f32 %v210_v38, %v436_v15 }
  0x97   :  { %v304_v61 = vadd.f32 %v272_v51, %v240_v50  ;;  %v306_v13 = vadd.f32 %v274_v52, %v242_v63 }
  0x9c   :  { %v209_v43 = vld [vmem:[%s1006_s3 + $0xa8] sm:$0xff]  ;;  %v211_v44 = vld [vmem:[%s1006_s3 + $0xb8] sm:$0xff] }
  0x9d   :  { %329 = vst.msk [vmem:[%s1007_s5 + $0x68] sm:$0xff] %vm155_vm0, %v297_v33  ;;  %330 = vst.msk [vmem:[%s1007_s5 + $0x70] sm:$0xff] %vm155_vm0, %v298_v39  ;;  %v241_v57 = vmul.f32 %v209_v43, %v410_v5  ;;  %v273_v58 = vmul.f32 %v211_v44, %v418_v9  ;;  %v275_v62 = vmul.f32 %v209_v43, %v423_v10 }
  0x9e   :  { %331 = vst.msk [vmem:[%s1007_s5 + $0x78] sm:$0xff] %vm155_vm0, %v299_v40  ;;  %v243_v3 = vmul.f32 %v211_v44, %v441_v16 }
  0x9f   :  { %v305_v4 = vadd.f32 %v273_v58, %v241_v57 }
  0xa0   :  { %v307_v14 = vadd.f32 %v275_v62, %v243_v3 }
  0xa5   :  { %v212_v53 = vld [vmem:[%s1006_s3 + $0xc0] sm:$0xff]  ;;  %v214_v54 = vld [vmem:[%s1006_s3 + $0xd0] sm:$0xff] }
  0xa6   :  { %332 = vst.msk [vmem:[%s1007_s5 + $0x80] sm:$0xff] %vm155_vm0, %v300_v45  ;;  %v244_v6 = vmul.f32 %v212_v53, %v389_v0  ;;  %v276_v7 = vmul.f32 %v214_v54, %v394_v1  ;;  %v278_v8 = vmul.f32 %v212_v53, %v399_v2  ;;  %v246_v23 = vmul.f32 %v214_v54, %v436_v15 }
  0xa8   :  { %v308_v21 = vadd.f32 %v276_v7, %v244_v6  ;;  %v310_v29 = vadd.f32 %v278_v8, %v246_v23 }
  0xad   :  { %v213_v59 = vld [vmem:[%s1006_s3 + $0xc8] sm:$0xff]  ;;  %v215_v60 = vld [vmem:[%s1006_s3 + $0xd8] sm:$0xff] }
  0xae   :  { %333 = vst.msk [vmem:[%s1007_s5 + $0x88] sm:$0xff] %vm155_vm0, %v301_v49  ;;  %334 = vst.msk [vmem:[%s1007_s5 + $0x90] sm:$0xff] %vm155_vm0, %v302_v55  ;;  %v245_v17 = vmul.f32 %v213_v59, %v410_v5  ;;  %v277_v18 = vmul.f32 %v215_v60, %v418_v9  ;;  %v279_v22 = vmul.f32 %v213_v59, %v423_v10 }
  0xaf   :  { %335 = vst.msk [vmem:[%s1007_s5 + $0x98] sm:$0xff] %vm155_vm0, %v303_v56  ;;  %v247_v24 = vmul.f32 %v215_v60, %v441_v16 }
  0xb0   :  { %v309_v25 = vadd.f32 %v277_v18, %v245_v17 }
  0xb1   :  { %v311_v30 = vadd.f32 %v279_v22, %v247_v24 }
  0xb6   :  { %v216_v11 = vld [vmem:[%s1006_s3 + $0xe0] sm:$0xff]  ;;  %v218_v12 = vld [vmem:[%s1006_s3 + $0xf0] sm:$0xff] }
  0xb7   :  { %336 = vst.msk [vmem:[%s1007_s5 + $0xa0] sm:$0xff] %vm155_vm0, %v304_v61  ;;  %v248_v26 = vmul.f32 %v216_v11, %v389_v0  ;;  %v280_v27 = vmul.f32 %v218_v12, %v394_v1  ;;  %v282_v28 = vmul.f32 %v216_v11, %v399_v2  ;;  %v250_v2 = vmul.f32 %v218_v12, %v436_v15 }
  0xb9   :  { %v312_v0 = vadd.f32 %v280_v27, %v248_v26 }
  0xbe   :  { %v217_v19 = vld [vmem:[%s1006_s3 + $0xe8] sm:$0xff]  ;;  %v219_v20 = vld [vmem:[%s1006_s3 + $0xf8] sm:$0xff] }
  0xbf   :  { %337 = vst.msk [vmem:[%s1007_s5 + $0xa8] sm:$0xff] %vm155_vm0, %v305_v4  ;;  %338 = vst.msk [vmem:[%s1007_s5 + $0xb0] sm:$0xff] %vm155_vm0, %v306_v13  ;;  %v249_v31 = vmul.f32 %v217_v19, %v410_v5  ;;  %v281_v32 = vmul.f32 %v219_v20, %v418_v9  ;;  %v283_v1 = vmul.f32 %v217_v19, %v423_v10 }
  0xc0   :  { %339 = vst.msk [vmem:[%s1007_s5 + $0xb8] sm:$0xff] %vm155_vm0, %v307_v14  ;;  %340 = vst.msk [vmem:[%s1007_s5 + $0xc0] sm:$0xff] %vm155_vm0, %v308_v21  ;;  %v251_v33 = vmul.f32 %v219_v20, %v441_v16  ;;  %v314_v9 = vadd.f32 %v282_v28, %v250_v2 }
  0xc1   :  { %341 = vst.msk [vmem:[%s1007_s5 + $0xc8] sm:$0xff] %vm155_vm0, %v309_v25  ;;  %342 = vst.msk [vmem:[%s1007_s5 + $0xd0] sm:$0xff] %vm155_vm0, %v310_v29  ;;  %v313_v5 = vadd.f32 %v281_v32, %v249_v31 }
  0xc2   :  { %343 = vst.msk [vmem:[%s1007_s5 + $0xd8] sm:$0xff] %vm155_vm0, %v311_v30  ;;  %344 = vst.msk [vmem:[%s1007_s5 + $0xe0] sm:$0xff] %vm155_vm0, %v312_v0  ;;  %v315_v10 = vadd.f32 %v283_v1, %v251_v33 }
  0xc3   :  { %345 = vst.msk [vmem:[%s1007_s5 + $0xe8] sm:$0xff] %vm155_vm0, %v313_v5  ;;  %346 = vst.msk [vmem:[%s1007_s5 + $0xf0] sm:$0xff] %vm155_vm0, %v314_v9 }
  0xc4   :  { %347 = vst.msk [vmem:[%s1007_s5 + $0xf8] sm:$0xff] %vm155_vm0, %v315_v10 }

</bundles_post_ra>
